<compile_context>
chip_gen: v5e
topology: v5e:2x2
jax: 0.10.0
libtpu: 0.0.40
codegen_flags: <defaults>
</compile_context>

<pallas_src>
import jax
import jax.numpy as jnp
import numpy as np
from jax.experimental import pallas as pl
from jax.experimental.pallas import tpu as pltpu


def make_divisible(v, divisor, min_value=None):
    if min_value is None:
        min_value = divisor
    new_v = max(min_value, int(v + divisor / 2) // divisor * divisor)
    if new_v < 0.9 * v:
        new_v += divisor
    return new_v


def _choose_batch_tile(B, bytes_per_img, max_block_bytes):
    """Largest divisor of B whose double-buffered in+out footprint fits the
    budget; prefer >= 2 grid steps (megacore on v7x) when B > 1."""
    divisors = [d for d in range(1, B + 1) if B % d == 0]
    feasible = [d for d in divisors if 4 * d * bytes_per_img <= max_block_bytes]
    if not feasible:
        return 1
    bt = feasible[-1]
    if bt == B and B > 1:
        proper = [d for d in feasible if d < B]
        if proper:
            bt = proper[-1]
    return bt


def se_layer(x_nchw, w1, b1, w2, b2, *, max_block_bytes=8 << 20):
    """x_nchw: (B, C, H, W); w1: (Chid, C); b1: (Chid,); w2: (C, Chid); b2: (C,)."""
    B, C, H, W = x_nchw.shape
    HW = H * W
    HWpad = ((HW + 127) // 128) * 128          # lane-dense last dim
    Chid = w1.shape[0]

    x_flat = x_nchw.reshape(B, C, HW)
    if HWpad != HW:
        # zero padding -> lane-sum in the kernel stays an exact spatial sum
        x_flat = jnp.pad(x_flat, ((0, 0), (0, 0), (0, HWpad - HW)))

    bytes_per_img = C * HWpad * x_flat.dtype.itemsize
    Bt = _choose_batch_tile(B, bytes_per_img, max_block_bytes)
    grid = (B // Bt,)

    # Pre-transpose the weights so the kernel does plain row-major matmuls.
    w1t = jnp.asarray(w1, jnp.float32).T            # (C, Chid)
    b1r = jnp.asarray(b1, jnp.float32).reshape(1, Chid)
    w2t = jnp.asarray(w2, jnp.float32).T            # (Chid, C)
    b2r = jnp.asarray(b2, jnp.float32).reshape(1, C)

    inv_hw = 1.0 / float(HW)                         # true (unpadded) HW

    def kernel(x_ref, w1t_ref, b1_ref, w2t_ref, b2_ref, o_ref):
        xb = x_ref[...]                              # (Bt, C, HWpad), x dtype
        # Global average pool (padded lanes are zero -> exact sum), f32 accum.
        pooled = jnp.sum(xb.astype(jnp.float32), axis=-1) * inv_hw     # (Bt, C)
        # fc1 + ReLU, batched over the Bt tile.
        h = jnp.dot(pooled, w1t_ref[...],
                    preferred_element_type=jnp.float32) + b1_ref[...]  # (Bt, Chid)
        h = jnp.maximum(h, 0.0)
        # fc2 + h_sigmoid.
        s = jnp.dot(h, w2t_ref[...],
                    preferred_element_type=jnp.float32) + b2_ref[...]  # (Bt, C)
        s = jnp.clip(s + 3.0, 0.0, 6.0) * (1.0 / 6.0)
        # Scale directly from the loaded tile (no re-materialization).
        o_ref[...] = xb * s.astype(xb.dtype)[:, :, None]

    out = pl.pallas_call(
        kernel,
        out_shape=jax.ShapeDtypeStruct((B, C, HWpad), x_flat.dtype),
        grid_spec=pltpu.PrefetchScalarGridSpec(
            num_scalar_prefetch=0,
            grid=grid,
            in_specs=[
                pl.BlockSpec((Bt, C, HWpad), lambda b: (b, 0, 0)),
                pl.BlockSpec((C, Chid), lambda b: (0, 0)),
                pl.BlockSpec((1, Chid), lambda b: (0, 0)),
                pl.BlockSpec((Chid, C), lambda b: (0, 0)),
                pl.BlockSpec((1, C), lambda b: (0, 0)),
            ],
            out_specs=pl.BlockSpec((Bt, C, HWpad), lambda b: (b, 0, 0)),
        ),
        compiler_params=pltpu.CompilerParams(
            dimension_semantics=("parallel",)),
        # input_output_aliases={0: 0} would save an HBM allocation, but the
        # padded x is an XLA intermediate here; left off for robustness.
    )(x_flat, w1t, b1r, w2t, b2r)

    if HWpad != HW:
        out = out[:, :, :HW]
    return out.reshape(B, C, H, W)


def se_layer_ref(x, w1, b1, w2, b2):
    # Pure-JAX reference mirroring the PyTorch forward.
    y = jnp.mean(x, axis=(2, 3))                    # (B, C)
    y = jnp.maximum(y @ w1.T + b1, 0.0)             # (B, Chid)
    y = y @ w2.T + b2                               # (B, C)
    y = jnp.clip(y + 3.0, 0.0, 6.0) / 6.0
    return x * y[:, :, None, None]


def _run_case(key, B, C, H, W, reduction=4):
    Chid = make_divisible(C // reduction, 8)
    kx, k1, k2, k3, k4 = jax.random.split(key, 5)
    x = jax.random.normal(kx, (B, C, H, W), dtype=jnp.float32)

    # Deterministic "nn.Linear"-style init (uniform +/- 1/sqrt(fan_in)).
    lim1 = 1.0 / np.sqrt(C)
    lim2 = 1.0 / np.sqrt(Chid)
    w1 = jax.random.uniform(k1, (Chid, C), jnp.float32, -lim1, lim1)
    b1 = jax.random.uniform(k2, (Chid,), jnp.float32, -lim1, lim1)
    w2 = jax.random.uniform(k3, (C, Chid), jnp.float32, -lim2, lim2)
    b2 = jax.random.uniform(k4, (C,), jnp.float32, -lim2, lim2)

    out = jax.block_until_ready(se_layer(x, w1, b1, w2, b2))
    ref = se_layer_ref(x, w1, b1, w2, b2)
    np.testing.assert_allclose(np.asarray(out), np.asarray(ref),
                               rtol=1e-5, atol=1e-5)


if __name__ == "__main__":
    key = jax.random.PRNGKey(0)
    k_a, k_b = jax.random.split(key)
    # MobileNet-like shape: HW=196 exercises the lane padding/masked-pool path,
    # C=8 keeps sublanes aligned, B=4 -> Bt=2, grid of 2 steps.
    _run_case(k_a, B=4, C=8, H=14, W=14)
    # Small original-style case: C<8 (full-extent block), HW already 128-aligned.
    _run_case(k_b, B=2, C=4, H=16, W=16)
    print("KERNEL_OK")
</pallas_src>

<mosaic_0001>
module attributes {stable_mosaic.version = 11 : i64} {
  func.func @kernel(%arg0: i32, %arg1: memref<2x8x256xf32, #tpu.memory_space<vmem>>, %arg2: memref<8x8xf32, #tpu.memory_space<vmem>>, %arg3: memref<1x8xf32, #tpu.memory_space<vmem>>, %arg4: memref<8x8xf32, #tpu.memory_space<vmem>>, %arg5: memref<1x8xf32, #tpu.memory_space<vmem>>, %arg6: memref<2x8x256xf32, #tpu.memory_space<vmem>>) attributes {dimension_semantics = [#tpu.dimension_semantics<parallel>], iteration_bounds = array<i64: 2>, scalar_prefetch = 0 : i64, scratch_operands = 0 : i64, tpu.core_type = #tpu.core_type<tc>, window_params = [{transform_indices = @transform_0, window_bounds = array<i64: 2, 8, 256>}, {pipeline_mode = #tpu.pipeline_mode<synchronous>, transform_indices = @transform_1, window_bounds = array<i64: 8, 8>}, {pipeline_mode = #tpu.pipeline_mode<synchronous>, transform_indices = @transform_2, window_bounds = array<i64: 1, 8>}, {pipeline_mode = #tpu.pipeline_mode<synchronous>, transform_indices = @transform_3, window_bounds = array<i64: 8, 8>}, {pipeline_mode = #tpu.pipeline_mode<synchronous>, transform_indices = @transform_4, window_bounds = array<i64: 1, 8>}, {transform_indices = @transform_5, window_bounds = array<i64: 2, 8, 256>}]} {
    %c0 = arith.constant 0 : index
    %c0_0 = arith.constant 0 : index
    %c0_1 = arith.constant 0 : index
    %0 = vector.load %arg1[%c0, %c0_0, %c0_1] : memref<2x8x256xf32, #tpu.memory_space<vmem>>, vector<2x8x256xf32>
    %cst = arith.constant dense<0.000000e+00> : vector<2x8xf32>
    %1 = vector.multi_reduction <add>, %0, %cst [2] : vector<2x8x256xf32> to vector<2x8xf32>
    %cst_2 = arith.constant 0.00510204071 : f32
    %2 = vector.broadcast %cst_2 : f32 to vector<2x8xf32>
    %3 = arith.mulf %1, %2 : vector<2x8xf32>
    %c0_3 = arith.constant 0 : index
    %c0_4 = arith.constant 0 : index
    %4 = vector.load %arg2[%c0_3, %c0_4] : memref<8x8xf32, #tpu.memory_space<vmem>>, vector<8x8xf32>
    %cst_5 = arith.constant dense<0.000000e+00> : vector<2x8xf32>
    %5 = tpu.matmul %3, %4, %cst_5 {dimension_numbers = #tpu.dot_dimension_numbers<[1], [0], [0], [1], [0, 0, 1, 1], [], []>} : vector<2x8xf32>, vector<8x8xf32>, vector<2x8xf32> -> vector<2x8xf32>
    %c0_6 = arith.constant 0 : index
    %c0_7 = arith.constant 0 : index
    %6 = vector.load %arg3[%c0_6, %c0_7] : memref<1x8xf32, #tpu.memory_space<vmem>>, vector<1x8xf32>
    %7 = vector.broadcast %6 : vector<1x8xf32> to vector<2x8xf32>
    %8 = arith.addf %5, %7 : vector<2x8xf32>
    %cst_8 = arith.constant 0.000000e+00 : f32
    %9 = vector.broadcast %cst_8 : f32 to vector<2x8xf32>
    %10 = arith.maximumf %8, %9 : vector<2x8xf32>
    %c0_9 = arith.constant 0 : index
    %c0_10 = arith.constant 0 : index
    %11 = vector.load %arg4[%c0_9, %c0_10] : memref<8x8xf32, #tpu.memory_space<vmem>>, vector<8x8xf32>
    %cst_11 = arith.constant dense<0.000000e+00> : vector<2x8xf32>
    %12 = tpu.matmul %10, %11, %cst_11 {dimension_numbers = #tpu.dot_dimension_numbers<[1], [0], [0], [1], [0, 0, 1, 1], [], []>} : vector<2x8xf32>, vector<8x8xf32>, vector<2x8xf32> -> vector<2x8xf32>
    %c0_12 = arith.constant 0 : index
    %c0_13 = arith.constant 0 : index
    %13 = vector.load %arg5[%c0_12, %c0_13] : memref<1x8xf32, #tpu.memory_space<vmem>>, vector<1x8xf32>
    %14 = vector.broadcast %13 : vector<1x8xf32> to vector<2x8xf32>
    %15 = arith.addf %12, %14 : vector<2x8xf32>
    %cst_14 = arith.constant 3.000000e+00 : f32
    %16 = vector.broadcast %cst_14 : f32 to vector<2x8xf32>
    %17 = arith.addf %15, %16 : vector<2x8xf32>
    %cst_15 = arith.constant 0.000000e+00 : f32
    %cst_16 = arith.constant 6.000000e+00 : f32
    %18 = vector.broadcast %cst_15 : f32 to vector<2x8xf32>
    %19 = arith.maximumf %18, %17 : vector<2x8xf32>
    %20 = vector.broadcast %cst_16 : f32 to vector<2x8xf32>
    %21 = arith.minimumf %20, %19 : vector<2x8xf32>
    %cst_17 = arith.constant 0.166666672 : f32
    %22 = vector.broadcast %cst_17 : f32 to vector<2x8xf32>
    %23 = arith.mulf %21, %22 : vector<2x8xf32>
    %24 = vector.shape_cast %23 : vector<2x8xf32> to vector<2x8x1xf32>
    %25 = vector.broadcast %24 : vector<2x8x1xf32> to vector<2x8x256xf32>
    %26 = arith.mulf %0, %25 : vector<2x8x256xf32>
    %c0_18 = arith.constant 0 : index
    %c0_19 = arith.constant 0 : index
    %c0_20 = arith.constant 0 : index
    %27 = vector.load %arg6[%c0_18, %c0_19, %c0_20] : memref<2x8x256xf32, #tpu.memory_space<vmem>>, vector<2x8x256xf32>
    tpu.vector_store %arg6[%c0_18, %c0_19, %c0_20], %26 {strides = array<i32>} : memref<2x8x256xf32, #tpu.memory_space<vmem>>, vector<2x8x256xf32>,
    return
  }
  func.func @transform_0(%arg0: i32) -> (i32, i32, i32) {
    %c0_i32 = arith.constant 0 : i32
    %c0_i32_0 = arith.constant 0 : i32
    %c0_i32_1 = arith.constant 0 : i32
    return %arg0, %c0_i32, %c0_i32_0 : i32, i32, i32
  }
  func.func @transform_1(%arg0: i32) -> (i32, i32) {
    %c0_i32 = arith.constant 0 : i32
    %c0_i32_0 = arith.constant 0 : i32
    %c0_i32_1 = arith.constant 0 : i32
    return %c0_i32, %c0_i32_0 : i32, i32
  }
  func.func @transform_2(%arg0: i32) -> (i32, i32) {
    %c0_i32 = arith.constant 0 : i32
    %c0_i32_0 = arith.constant 0 : i32
    %c0_i32_1 = arith.constant 0 : i32
    return %c0_i32, %c0_i32_0 : i32, i32
  }
  func.func @transform_3(%arg0: i32) -> (i32, i32) {
    %c0_i32 = arith.constant 0 : i32
    %c0_i32_0 = arith.constant 0 : i32
    %c0_i32_1 = arith.constant 0 : i32
    return %c0_i32, %c0_i32_0 : i32, i32
  }
  func.func @transform_4(%arg0: i32) -> (i32, i32) {
    %c0_i32 = arith.constant 0 : i32
    %c0_i32_0 = arith.constant 0 : i32
    %c0_i32_1 = arith.constant 0 : i32
    return %c0_i32, %c0_i32_0 : i32, i32
  }
  func.func @transform_5(%arg0: i32) -> (i32, i32, i32) {
    %c0_i32 = arith.constant 0 : i32
    %c0_i32_0 = arith.constant 0 : i32
    %c0_i32_1 = arith.constant 0 : i32
    return %arg0, %c0_i32, %c0_i32_0 : i32, i32, i32
  }
}

</mosaic_0001>

<bundles_post_ra>
// kernel: tpu_custom_call.1
= control target key start
LH: loop header
LB: loop body
LE: loop exit
PB: predicated region body
PF: predicated region fallthrough
CT: control target
= control target key end

     0   :  { %s943_s0 = inlined_call_operand.hbm [shape: f32[4,8,256], index: 0, kind: input, shape index: {}]   ;;  %s944_s1 = inlined_call_operand.hbm [shape: f32[8,8], index: 1, kind: input, shape index: {}]   ;;  %s945_s2 = inlined_call_operand.vmem [shape: f32[1,8], index: 2, kind: input, shape index: {}]   ;;  %s946_s3 = inlined_call_operand.hbm [shape: f32[8,8], index: 3, kind: input, shape index: {}]   ;;  %s947_s4 = inlined_call_operand.vmem [shape: f32[1,8], index: 4, kind: input, shape index: {}]   ;;  %s948_s5 = inlined_call_operand.hbm [shape: f32[4,8,256], index: 5, kind: output, shape index: {}]  }
   0x1   :  { %949 = sst [smem:[#allocation12_spill]] %s944_s1 }
   0x2   :  { %950 = sst [smem:[#allocation13_spill]] %s946_s3 }
   0x3   :  { %10 = vsyncpa [#allocation3], 0 }
   0x4   :  { %12 = vsyncpa [#allocation3 + $0x1], 0 }
   0x5   :  { %13 = vsyncpa [#allocation6], 0 }
   0x6   :  { %14 = vsyncpa [#allocation4], 0 }
   0x7   :  { %16 = vsyncpa [#allocation4 + $0x1], 0  ;;  %s788_s18 = smov 0   ;;  %s790_s19 = smov 0  }
   0x8   :  { %s792_s20 = smov 0   ;;  %s794_s21 = smov 0  }
   0x9 LB: > { %s809_s22 = sadd.s32 4294967295, %s750_s21   ;;  %s489_s23 = sadd.s32 4294967294, %s750_s21   ;;  %s750_s21 = sphi %s794_s21, %s963_s21   ;;  %s746_s20 = sphi %s792_s20, %s962_s20   ;;  %s742_s19 = sphi %s790_s19, %s961_s19   ;;  %s738_s18 = sphi %s788_s18, %s960_s18  }
   0xa   : > { %s813_s24 = sadd.s32 1, %s750_s21   ;;  %s29_s25 = sadd.s32 1, %s746_s20 }
   0xb   : > { %s26_s26 = ssub.s32 %s750_s21, %s813_s24  ;;  %p36_p0 = scmp.ne.s32.totalorder %s746_s20, %s742_s19 }
   0xc   : > { %p27_p1 = scmp.eq.s32.totalorder %s26_s26, 0  ;;  %p37_p2 = scmp.eq.s32.totalorder %s750_s21, 0 }
   0xd   : > { %p42_p3 = scmp.ne.s32.totalorder %s742_s19, %s738_s18  ;;  %p43_p4 = scmp.eq.s32.totalorder %s809_s22, 0 }
   0xe   : > { %s825_s27 = scalar_select %p27_p1, %s746_s20, %s29_s25  }
   0xf   : > { %p827_p5 = por %p37_p2, %p36_p0  ;;  %p833_p6 = por %p43_p4, %p42_p3 }
  0x10   : > { %p150_p7 = scmp.eq.s32.totalorder %s809_s22, 1  ;;  %p156_p8 = scmp.eq.s32.totalorder %s489_s23, 1 }
  0x11   : > { %p490_p9 = scmp.ge.s32.totalorder %s750_s21, 1  ;;  %p163_p10 = scmp.lt.s32.totalorder %s750_s21, 3 }
  0x12   : > { %p840_p11 = por %p150_p7, %p36_p0  ;;  %p844_p12 = por %p156_p8, %p42_p3 }
  0x13   : > { %p848_p13 = pnand %p490_p9, %p163_p10  ;;  %s956_s1 = sld [smem:[#allocation12_spill]] }
  0x14   : > { %s752_s11 = smov [#allocation5]   ;;  %p544_p3 = scmp.lt.s32.totalorder %s750_s21, 2 }
  0x15   : > { %p527_p1 = pneg %p848_p13  ;;  %s177_s12 = sshll.u32 %s752_s11, 4  ;;  %s178_s12 = int_to_ptr.vmem [resolvable:$true] %s177_s12 }
  0x16   : > { %s957_s3 = sld [smem:[#allocation13_spill]]  ;;  %p866_p7 = pnand %p544_p3, %p827_p5 }
  0x17   : > { %p528_p2 = pnand %p527_p1, %p43_p4  ;;  %s753_s17 = smov [#allocation7]  }
  0x18   : > { %s192_s23 = sshll.u32 %s753_s17, 4  ;;  %s206_s25 = sand.u32 1, %s746_s20   ;;  %s193_s23 = int_to_ptr.vmem [resolvable:$true] %s192_s23 }
  0x19   : > { %s175_s10 = sshll.u32 %s956_s1, 4  ;;  %s494_s26 = sshll.u32 %s206_s25, 5  ;;  %s176_s10 = int_to_ptr.hbm [resolvable:$true] %s175_s10 }
  0x1a   : > { %530 = dma.hbm_to_vmem [thread:$0]  (!%p528_p2), %s176_s10, 128, %s178_s12, [#allocation6]  }
  0x1b   : > { %s512_s8 = sshll.u32 %s750_s21, 5  ;;  %s210_s14 = scalar_lea.vmem [#allocation2], %s494_s26 }
  0x1c   : > { %s190_s15 = sshll.u32 %s957_s3, 4  ;;  %s216_s13 = scalar_lea.hbm %s943_s0, %s512_s8  ;;  %s191_s15 = int_to_ptr.hbm [resolvable:$true] %s190_s15 }
  0x1d   : > { %533 = dma.hbm_to_vmem [thread:$0]  (!%p528_p2), %s191_s15, 128, %s193_s23, [#allocation6]  }
  0x1e   : > { %s219_s1 = sshll.u32 %s210_s14, 4  ;;  %s217_s10 = sshll.u32 %s216_s13, 4  ;;  %s220_s1 = int_to_ptr.vmem [resolvable:$true] %s219_s1  ;;  %s218_s10 = int_to_ptr.hbm [resolvable:$true] %s217_s10 }
  0x1f   : > { %s207_s28 = scalar_lea.sflag [#allocation3], %s206_s25  ;;  %s650_s12 = sshra.s32 %s218_s10, 4  ;;  %s651_s12 = int_to_ptr.hbm [resolvable:$true] %s650_s12 }
  0x20   : > { %s652_s3 = scalar_lea.hbm %s651_s12, 32  ;;  %p654_p8 = pneg %p866_p7 }
  0x21   : > { %p653_p5 = scmp.ne.s32.totalorder %s651_s12, %s652_s3  ;;  %s657_s23 = scalar_lea.hbm %s943_s0, 64 }
  0x22   : > { %p658_p1 = scmp.lt.s32.totalorder %s651_s12, %s943_s0  ;;  %p659_p2 = scmp.lt.s32.totalorder %s657_s23, %s652_s3 }
  0x23   : > { %p655_p9 = pnand %p654_p8, %p653_p5 }
  0x24   : > { %p660_p3 = por %p659_p2, %p658_p1 }
  0x25   : > { %p656_p10 = pneg %p655_p9 }
  0x27   : > { %p661_p0 = pnand %p660_p3, %p656_p10 }
  0x29   : > { %664 = shalt.err (!%p661_p0)
}
  0x2a   : > { %s754_s25 = smov 256   ;;  %s755_s26 = smov 16  }
  0x2b   : > { %537 = dma.hbm_to_vmem [thread:$0]  (!%p866_p7), %s218_s10, 512, %s220_s1, %s207_s28, %s754_s25, %s754_s25, %s755_s26  }
  0x2c   : > { %231 = sbr.rel (%p848_p13) target bundleno = 582 (0x246), region = 40  ;;  %s888_s11 = sand.u32 (!%p848_p13), 1, %s742_s19  }
  0x2d   : > { %s499_s13 = sshll.u32 (!%p848_p13), %s888_s11, 5  ;;  %s234_s3 = scalar_lea.sflag (!%p848_p13), [#allocation3], %s888_s11 }
  0x2e   : > { %s237_s14 = scalar_lea.vmem (!%p848_p13), [#allocation2], %s499_s13 }
  0x31   : > { %725 = dma.done.wait (%p833_p6), %s234_s3, 512  }
  0x32   : > { %727 = vsyncadd (%p833_p6), %s234_s3, 4294966784 }
  0x33   : > { %729 = dma.done.wait (%p43_p4), [#allocation6], 256  }
  0x34   : > { %731 = vsyncadd (%p43_p4), [#allocation6], 4294967040  ;;  %v277_v0 = vld [vmem:[%s237_s14] sm:$0xff]  ;;  %v278_v1 = vld [vmem:[%s237_s14 + $0x8] sm:$0xff]  ;;  %v296_v8 = vlaneseq  ;;  %vm300_vm0 = vcmask 1041409   ;;  %vm302_vm1 = vcmask 64512  }
  0x35   : > { %v281_v2 = vadd.f32 %v278_v1, %v277_v0  ;;  %v279_v3 = vld [vmem:[%s237_s14 + $0x10] sm:$0xff]  ;;  %v280_v4 = vld [vmem:[%s237_s14 + $0x18] sm:$0xff]  ;;  %v289_v6 = vld [vmem:[#allocation5] sm:$0xff]  ;;  %s514_s10 = sshll.u32 %s809_s22, 5  ;;  %s274_s28 = scalar_lea.vmem [#allocation8], %s499_s13 }
  0x36   : > { %v284_v5 = vadd.f32 %v280_v4, %v279_v3  ;;  %320 = vmatpush.msra.mxu0 %v289_v6  ;;  %v297_v9 = vand.u32 127, %v296_v8  ;;  %v326_v16 = vld [vmem:[#allocation7] sm:$0xff]  ;;  %v588_v17 = vld [vmem:[%s945_s2] ss:$0 sm:$0xff]  ;;  %v360_v21 = vshrl.u32 %v296_v8, 7  ;;  %s393_s17 = scalar_lea.hbm %s948_s5, %s514_s10  ;;  %s394_s23 = sshll.u32 %s274_s28, 4  ;;  %s395_s23 = int_to_ptr.vmem [resolvable:$true] %s394_s23 }
  0x37   : > { %282 = vadd.xlane.f32.xlu0 %v281_v2  ;;  %349 = vmatpush.msra.mxu1 %v326_v16  ;;  %v589_v22 = vld [vmem:[%s947_s4] ss:$0 sm:$0xff]  ;;  %s396_s9 = sshll.u32 %s393_s17, 4  ;;  %s381_s22 = scalar_lea.sflag [#allocation4], %s888_s11  ;;  %s397_s9 = int_to_ptr.hbm [resolvable:$true] %s396_s9 }
  0x38   : > { %586 = vset.pattern.permute.xlu1 %v360_v21  ;;  %587 = vset.pattern.permute.xlu0 %v360_v21  ;;  %s694_s8 = sshra.s32 %s397_s9, 4  ;;  %s700_s3 = scalar_lea.hbm %s948_s5, 64  ;;  %s695_s8 = int_to_ptr.hbm [resolvable:$true] %s694_s8 }
  0x39   : > { %s696_s25 = scalar_lea.hbm %s695_s8, 32  ;;  %p701_p0 = scmp.lt.s32.totalorder %s695_s8, %s948_s5 }
  0x3a   : > { %p697_p4 = scmp.ne.s32.totalorder %s695_s8, %s696_s25  ;;  %p702_p7 = scmp.lt.s32.totalorder %s700_s3, %s696_s25 }
  0x3c   : > { %p698_p6 = pnand %p697_p4, %p840_p11  ;;  %p703_p5 = por %p702_p7, %p701_p0 }
  0x3e   : > { %p699_p13 = pneg %p698_p6 }
  0x3f   : > { %285 = vadd.xlane.f32.xlu0 %v284_v5 }
  0x40   : > { %p704_p8 = pnand %p703_p5, %p699_p13 }
  0xaa   : > { %v283_v7 = vpop.xlane.xlu0 %282 }
  0xab   : > { %v287_v10 = vmul.f32 0.0051020407, %v283_v7 }
  0xad   : > { %v298_v13 = vperm.slane %v287_v10, %v297_v9 }
  0xb2   : > { %v286_v11 = vpop.xlane.xlu0 %285 }
  0xb3   : > { %v288_v12 = vmul.f32 0.0051020407, %v286_v11 }
  0xb5   : > { %v299_v14 = vperm.slane %v288_v12, %v297_v9 }
  0xb7   : > { %v301_v15 = vsel %vm300_vm0, %v299_v14, %v298_v13 }
  0xb8   : > { %503 = vmatmul.msk.f32.vlgmr.msra.gmra.mxu0 %vm302_vm1, %v301_v15 }
 0x135   : > { %v322_v18 = vpop.f32.mrf.mxu0 }
 0x136   : > { %v323_v19 = vadd.f32 %v588_v17, %v322_v18 }
 0x138   : > { %v325_v20 = vmax.f32 %v323_v19, 0.0 }
 0x13a   : > { %504 = vmatmul.msk.f32.vlgmr.msra.gmra.mxu1 %vm302_vm1, %v325_v20 }
 0x1b7   : > { %v351_v23 = vpop.f32.mrf.mxu1 }
 0x1b8   : > { %v352_v24 = vadd.f32 %v589_v22, %v351_v23 }
 0x1ba   : > { %v354_v25 = vadd.f32 3.0, %v352_v24 }
 0x1bc   : > { %v355_v26 = vmax.f32 %v354_v25, 0.0 }
 0x1be   : > { %v356_v27 = vmin.f32 %v355_v26, 6.0 }
 0x1c0   : > { %v357_v28 = vmul.f32 0.16666667, %v356_v27 }
 0x1c2   : > { %v358_v29 = vperm.slane %v357_v28, 0  ;;  %v365_v30 = vperm.slane %v357_v28, 1 }
 0x1c4   : > { %363 = vperm.xlu1 %586, %v358_v29  }
 0x1cc   : > { %370 = vperm.xlu1 %586, %v365_v30  }
 0x236   : > { %v364_v31 = vpop.permute.xlu1 %363 }
 0x237   : > { %v372_v32 = vmul.f32 %v364_v31, %v277_v0  ;;  %v373_v33 = vmul.f32 %v364_v31, %v278_v1 }
 0x239   : > { %376 = vst [vmem:[%s274_s28] sm:$0xff] %v372_v32 }
 0x23a   : > { %377 = vst [vmem:[%s274_s28 + $0x8] sm:$0xff] %v373_v33 }
 0x23e   : > { %v371_v34 = vpop.permute.xlu1 %370 }
 0x23f   : > { %v374_v35 = vmul.f32 %v371_v34, %v279_v3  ;;  %v375_v36 = vmul.f32 %v371_v34, %v280_v4 }
 0x241   : > { %378 = vst [vmem:[%s274_s28 + $0x10] sm:$0xff] %v374_v35 }
 0x242   : > { %379 = vst [vmem:[%s274_s28 + $0x18] sm:$0xff] %v375_v36 }
 0x243   : > { %707 = shalt.err (!%p704_p8)
}
 0x244   : > { %s756_s11 = smov 256   ;;  %s757_s29 = smov 16  }
 0x245   : > { %525 = dma.vmem_to_hbm [thread:$0]  (%p840_p11), %s395_s23, 512, %s397_s9, %s381_s22, %s756_s11, %s756_s11, %s757_s29  }
 0x246 PF: > { %s411_s7 = sand.u32 1, %s738_s18   ;;  %p959_p9 = scmp.ge.s32.totalorder %s750_s21, 2 }
 0x247   : > { %s412_s16 = scalar_lea.sflag [#allocation4], %s411_s7 }
 0x248   : > { %p539_p10 = pnand %p959_p9, %p844_p12 }
 0x24a   : > { %p540_p1 = pneg %p539_p10 }
 0x24c   : > { %733 = dma.done.wait (%p540_p1), %s412_s16, 512  }
 0x24d   : > { %735 = vsyncadd (%p540_p1), %s412_s16, 4294966784  ;;  %p19_p2 = scmp.ge.s32.totalorder %s813_s24, 4   ;;  %s960_s18 = smov %s742_s19 }
 0x24e   : > { %s961_s19 = smov %s746_s20  ;;  %s962_s20 = smov %s825_s27 }
 0x24f   : > { %s963_s21 = smov %s813_s24  ;;  %21 = sbr.rel (!%p19_p2) target bundleno = 9 (0x9), region = 93 }
 0x254   :  { %418 = vsyncpa [#allocation3], 1 }
 0x255   :  { %420 = vsyncpa [#allocation3 + $0x1], 1 }
 0x256   :  { %421 = vsyncpa [#allocation6], 1 }
 0x257   :  { %422 = vsyncpa [#allocation4], 1 }
 0x258   :  { %424 = vsyncpa [#allocation4 + $0x1], 1 }

</bundles_post_ra>
